<compile_context>
chip_gen: v7x
topology: tpu7x:2x2x1
jax: 0.10.0
libtpu: 0.0.40
codegen_flags: <defaults>
</compile_context>

<pallas_src>
import jax
import jax.numpy as jnp
from jax.experimental import pallas as pl
from jax.experimental.pallas import tpu as pltpu

# --- problem dimensions (from the PyTorch module) ---
DIM_U = 1
DIM_XC = 1
DIM_UE = DIM_U + DIM_XC      # 2
DIM_X = 2
DIM_XE = DIM_X + DIM_XC      # 3
HIDDEN = 32                  # controller hidden width

# --- pendulum constants ---
M_MASS = 0.1
LEN = 2.0
GRAV = 9.81
INERTIA = 1.0 / 3.0
DDOT_COEF = M_MASS * GRAV * LEN / (2.0 * INERTIA)   # 2.943
INV_I = 1.0 / INERTIA                               # 3.0

PI = float(jnp.pi)
TWO_PI = 2.0 * PI
INV_TWO_PI = 1.0 / TWO_PI


def pendulum_kernel(x_ref, w1t_ref, b1t_ref, w2t_ref, b2t_ref,
                    dxdt_ref, ue_ref):
    """Lane-dense kernel: x_ref is (3, TB) f32 with batch in lanes."""
    x = x_ref[...]                                          # (3, TB) f32
    rows = jax.lax.broadcasted_iota(jnp.int32, x.shape, 0)

    # wrap_angle(theta) = (theta + pi) mod (2*pi) - pi, computed on the whole
    # tile via reciprocal-multiply + floor (no EUP divide; 1-ulp edge cases at
    # odd multiples of pi accepted), selected into row 0 with a VPU where.
    a = x + PI
    wrapped = jnp.where(rows == 0,
                        a - TWO_PI * jnp.floor(a * INV_TWO_PI) - PI,
                        x)                                  # (3, TB) f32

    # Controller MLP (lane-dense).  compute dtype follows the weights: bf16
    # weights -> bf16 MXU inputs + bf16 tanh (halves EUP pushes on v6e/v7x),
    # accumulation stays f32 via preferred_element_type.
    cdt = w1t_ref.dtype
    pre = jnp.dot(w1t_ref[...], wrapped.astype(cdt),
                  preferred_element_type=jnp.float32) + b1t_ref[...]
    h = jnp.tanh(pre.astype(cdt))                           # (H, TB)
    ue = (jnp.dot(w2t_ref[...], h, preferred_element_type=jnp.float32)
          + b2t_ref[...])                                   # (2, TB) f32
    ue_ref[...] = ue

    # dxdt assembly with per-row ref loads/stores (masked vld/vst); no tiny
    # selector matmuls and no value-level sublane relayouts.
    th = x_ref[0:1, :]                                      # theta row (1, TB)
    a0 = th + PI
    theta_w = a0 - TWO_PI * jnp.floor(a0 * INV_TWO_PI) - PI
    dxdt_ref[0:1, :] = x_ref[1:2, :]                        # theta_dot
    dxdt_ref[1:2, :] = (DDOT_COEF * jnp.sin(theta_w)
                        + INV_I * ue_ref[1:2, :])           # theta_ddot
    dxdt_ref[2:3, :] = ue_ref[0:1, :]                       # xc_dot = ue[0]


def _tile_size(batch, block_b):
    """Pick a lane-tile size: big enough to amortize grid overhead, small
    enough for the chip's VMEM, and giving >=2 grid steps for large batches
    so v7x's two TensorCores both get work."""
    try:
        phys_vmem = int(pltpu.get_tpu_info().vmem_capacity_bytes)
    except Exception:
        phys_vmem = 64 << 20                     # conservative (v7x per-TC)
    vmem_limit = min(int(phys_vmem * 0.6), 64 << 20)
    # ~bytes of VMEM per batch lane: (3,tb)/(3,tb)/(2,tb) io tiles padded to 8
    # sublanes and double-buffered + (32,tb) f32 hidden temporaries + slack.
    per_lane_bytes = 640
    tb_cap = max(128, ((vmem_limit // 2) // per_lane_bytes) // 128 * 128)
    half = pl.cdiv(pl.cdiv(batch, 2), 128) * 128  # >=2 grid steps when possible
    tb = max(128, min(block_b, tb_cap, half))
    tb = (tb // 128) * 128
    return tb, vmem_limit


def prepare_controller_params(w1, b1, w2, b2, *, compute_dtype=jnp.float32):
    """One-time relayout of controller params into kernel-friendly form."""
    return (w1.astype(compute_dtype).T,                   # (H, 3)
            b1.astype(jnp.float32).reshape(HIDDEN, 1),    # (H, 1)
            w2.astype(compute_dtype).T,                   # (2, H)
            b2.astype(jnp.float32).reshape(DIM_UE, 1))    # (2, 1)


def pendulum_model_forward_lane_dense(x_t, w1t, b1t, w2t, b2t, *,
                                      block_b=32768):
    """Canonical entry point.  x_t: (3, B) f32 (batch in lanes).
    Returns (dxdt: (3, B) f32, ue: (2, B) f32)."""
    _, batch = x_t.shape
    tb, vmem_limit = _tile_size(batch, block_b)
    b_pad = pl.cdiv(batch, tb) * tb

    x_t = x_t.astype(jnp.float32)
    if b_pad != batch:
        x_t = jnp.pad(x_t, ((0, 0), (0, b_pad - batch)))

    grid = (b_pad // tb,)
    dxdt_t, ue_t = pl.pallas_call(
        pendulum_kernel,
        out_shape=(
            jax.ShapeDtypeStruct((DIM_XE, b_pad), jnp.float32),
            jax.ShapeDtypeStruct((DIM_UE, b_pad), jnp.float32),
        ),
        grid=grid,
        in_specs=[
            pl.BlockSpec((DIM_XE, tb), lambda i: (0, i)),        # state tile
            pl.BlockSpec((HIDDEN, DIM_XE), lambda i: (0, 0)),    # W1^T resident
            pl.BlockSpec((HIDDEN, 1), lambda i: (0, 0)),         # b1 resident
            pl.BlockSpec((DIM_UE, HIDDEN), lambda i: (0, 0)),    # W2^T resident
            pl.BlockSpec((DIM_UE, 1), lambda i: (0, 0)),         # b2 resident
        ],
        out_specs=(
            pl.BlockSpec((DIM_XE, tb), lambda i: (0, i)),
            pl.BlockSpec((DIM_UE, tb), lambda i: (0, i)),
        ),
        compiler_params=pltpu.CompilerParams(
            dimension_semantics=("parallel",),
            vmem_limit_bytes=int(vmem_limit)),
    )(x_t, w1t, b1t, w2t, b2t)

    if b_pad != batch:
        dxdt_t = dxdt_t[:, :batch]
        ue_t = ue_t[:, :batch]
    return dxdt_t, ue_t


def pendulum_model_forward(state, w1, b1, w2, b2, *, block_b=32768,
                           compute_dtype=jnp.float32):
    """Torch-parity entry: state (B, 3) -> (dxdt (B, 3), ue (B, 2)).
    Prefer the lane-dense entry in an integration loop (it avoids the extra
    transpose HBM passes this wrapper pays)."""
    params = prepare_controller_params(w1, b1, w2, b2,
                                       compute_dtype=compute_dtype)
    dxdt_t, ue_t = pendulum_model_forward_lane_dense(
        state.astype(jnp.float32).T, *params, block_b=block_b)
    return dxdt_t.T, ue_t.T


def reference_forward(state, w1, b1, w2, b2):
    """Pure-JAX reference (torch semantics) for correctness check."""
    theta = jnp.mod(state[:, 0:1] + jnp.pi, 2.0 * jnp.pi) - jnp.pi
    theta_dot = state[:, 1:2]
    xc = state[:, 2:3]
    wrapped = jnp.concatenate([theta, theta_dot, xc], axis=-1)
    h = jnp.tanh(wrapped @ w1 + b1)
    ue = h @ w2 + b2
    theta_ddot = DDOT_COEF * jnp.sin(theta)
    dxdt = jnp.concatenate(
        [theta_dot, theta_ddot + INV_I * ue[:, 1:2], ue[:, 0:1]], axis=-1
    )
    return dxdt, ue


if __name__ == "__main__":
    key = jax.random.PRNGKey(0)
    k_state, k_w1, k_b1, k_w2, k_b2, k_state2 = jax.random.split(key, 6)

    B = 8
    # state = [theta, theta_dot, xc]; theta unbounded to exercise wrap_angle.
    state = jax.random.normal(k_state, (B, DIM_XE), dtype=jnp.float32) * 4.0

    # Deterministic controller parameters (synthetic; not a checkpoint).
    w1 = jax.random.normal(k_w1, (DIM_XE, HIDDEN), dtype=jnp.float32) * 0.1
    b1 = jax.random.normal(k_b1, (HIDDEN,), dtype=jnp.float32) * 0.1
    w2 = jax.random.normal(k_w2, (HIDDEN, DIM_UE), dtype=jnp.float32) * 0.1
    b2 = jax.random.normal(k_b2, (DIM_UE,), dtype=jnp.float32) * 0.1

    ref_dxdt, ref_ue = reference_forward(state, w1, b1, w2, b2)

    # 1) default f32 path (torch-parity tolerance).
    dxdt, ue = pendulum_model_forward(state, w1, b1, w2, b2)
    jax.block_until_ready((dxdt, ue))
    assert dxdt.shape == (B, DIM_XE) and ue.shape == (B, DIM_UE)
    assert jnp.allclose(dxdt, ref_dxdt, atol=1e-4, rtol=1e-4)
    assert jnp.allclose(ue, ref_ue, atol=1e-4, rtol=1e-4)

    # 2) canonical lane-dense entry with a multi-step grid + lane padding.
    B2 = 300
    state2 = jax.random.normal(k_state2, (B2, DIM_XE), dtype=jnp.float32) * 4.0
    params = prepare_controller_params(w1, b1, w2, b2)
    dxdt2_t, ue2_t = pendulum_model_forward_lane_dense(
        state2.T, *params, block_b=256)
    jax.block_until_ready((dxdt2_t, ue2_t))
    ref_dxdt2, ref_ue2 = reference_forward(state2, w1, b1, w2, b2)
    assert dxdt2_t.shape == (DIM_XE, B2) and ue2_t.shape == (DIM_UE, B2)
    assert jnp.allclose(dxdt2_t.T, ref_dxdt2, atol=1e-4, rtol=1e-4)
    assert jnp.allclose(ue2_t.T, ref_ue2, atol=1e-4, rtol=1e-4)

    # 3) bf16 compute path (EUP/MXU optimization for v6e/v7x), looser tolerance.
    dxdt_bf, ue_bf = pendulum_model_forward(state, w1, b1, w2, b2,
                                            compute_dtype=jnp.bfloat16)
    jax.block_until_ready((dxdt_bf, ue_bf))
    assert jnp.allclose(dxdt_bf, ref_dxdt, atol=2e-1, rtol=0.0)
    assert jnp.allclose(ue_bf, ref_ue, atol=2e-1, rtol=0.0)

    print("KERNEL_OK")
</pallas_src>

<mosaic_0001>
module attributes {stable_mosaic.version = 11 : i64} {
  func.func @pendulum_kernel(%arg0: i32, %arg1: memref<3x128xf32, #tpu.memory_space<vmem>>, %arg2: memref<32x3xf32, #tpu.memory_space<vmem>>, %arg3: memref<32x1xf32, #tpu.memory_space<vmem>>, %arg4: memref<2x32xf32, #tpu.memory_space<vmem>>, %arg5: memref<2x1xf32, #tpu.memory_space<vmem>>, %arg6: memref<3x128xf32, #tpu.memory_space<vmem>>, %arg7: memref<2x128xf32, #tpu.memory_space<vmem>>) attributes {dimension_semantics = [#tpu.dimension_semantics<parallel>], iteration_bounds = array<i64: 1>, scalar_prefetch = 0 : i64, scratch_operands = 0 : i64, tpu.core_type = #tpu.core_type<tc>, window_params = [{transform_indices = @transform_0, window_bounds = array<i64: 3, 128>}, {pipeline_mode = #tpu.pipeline_mode<synchronous>, transform_indices = @transform_1, window_bounds = array<i64: 32, 3>}, {pipeline_mode = #tpu.pipeline_mode<synchronous>, transform_indices = @transform_2, window_bounds = array<i64: 32, 1>}, {pipeline_mode = #tpu.pipeline_mode<synchronous>, transform_indices = @transform_3, window_bounds = array<i64: 2, 32>}, {pipeline_mode = #tpu.pipeline_mode<synchronous>, transform_indices = @transform_4, window_bounds = array<i64: 2, 1>}, {transform_indices = @transform_5, window_bounds = array<i64: 3, 128>}, {transform_indices = @transform_6, window_bounds = array<i64: 2, 128>}]} {
    %c0 = arith.constant 0 : index
    %c0_0 = arith.constant 0 : index
    %0 = vector.load %arg1[%c0, %c0_0] : memref<3x128xf32, #tpu.memory_space<vmem>>, vector<3x128xf32>
    %1 = tpu.iota {dimensions = array<i32: 0>} : vector<3x128xi32>
    %cst = arith.constant 3.14159274 : f32
    %2 = vector.broadcast %cst : f32 to vector<3x128xf32>
    %3 = arith.addf %0, %2 : vector<3x128xf32>
    %c0_i32 = arith.constant 0 : i32
    %4 = vector.broadcast %c0_i32 : i32 to vector<3x128xi32>
    %5 = arith.cmpi eq, %1, %4 : vector<3x128xi32>
    %cst_1 = arith.constant 0.159154937 : f32
    %6 = vector.broadcast %cst_1 : f32 to vector<3x128xf32>
    %7 = arith.mulf %3, %6 : vector<3x128xf32>
    %8 = math.floor %7 : vector<3x128xf32>
    %cst_2 = arith.constant 6.28318548 : f32
    %9 = vector.broadcast %cst_2 : f32 to vector<3x128xf32>
    %10 = arith.mulf %9, %8 : vector<3x128xf32>
    %11 = arith.subf %3, %10 : vector<3x128xf32>
    %cst_3 = arith.constant 3.14159274 : f32
    %12 = vector.broadcast %cst_3 : f32 to vector<3x128xf32>
    %13 = arith.subf %11, %12 : vector<3x128xf32>
    %14 = arith.select %5, %13, %0 : vector<3x128xi1>, vector<3x128xf32>
    %c0_4 = arith.constant 0 : index
    %c0_5 = arith.constant 0 : index
    %15 = vector.load %arg2[%c0_4, %c0_5] : memref<32x3xf32, #tpu.memory_space<vmem>>, vector<32x3xf32>
    %cst_6 = arith.constant dense<0.000000e+00> : vector<32x128xf32>
    %16 = tpu.matmul %15, %14, %cst_6 {dimension_numbers = #tpu.dot_dimension_numbers<[1], [0], [0], [1], [0, 0, 1, 1], [], []>} : vector<32x3xf32>, vector<3x128xf32>, vector<32x128xf32> -> vector<32x128xf32>
    %c0_7 = arith.constant 0 : index
    %c0_8 = arith.constant 0 : index
    %17 = vector.load %arg3[%c0_7, %c0_8] : memref<32x1xf32, #tpu.memory_space<vmem>>, vector<32x1xf32>
    %18 = vector.broadcast %17 : vector<32x1xf32> to vector<32x128xf32>
    %19 = arith.addf %16, %18 : vector<32x128xf32>
    %20 = math.tanh %19 : vector<32x128xf32>
    %c0_9 = arith.constant 0 : index
    %c0_10 = arith.constant 0 : index
    %21 = vector.load %arg4[%c0_9, %c0_10] : memref<2x32xf32, #tpu.memory_space<vmem>>, vector<2x32xf32>
    %cst_11 = arith.constant dense<0.000000e+00> : vector<2x128xf32>
    %22 = tpu.matmul %21, %20, %cst_11 {dimension_numbers = #tpu.dot_dimension_numbers<[1], [0], [0], [1], [0, 0, 1, 1], [], []>} : vector<2x32xf32>, vector<32x128xf32>, vector<2x128xf32> -> vector<2x128xf32>
    %c0_12 = arith.constant 0 : index
    %c0_13 = arith.constant 0 : index
    %23 = vector.load %arg5[%c0_12, %c0_13] : memref<2x1xf32, #tpu.memory_space<vmem>>, vector<2x1xf32>
    %24 = vector.broadcast %23 : vector<2x1xf32> to vector<2x128xf32>
    %25 = arith.addf %22, %24 : vector<2x128xf32>
    %c0_14 = arith.constant 0 : index
    %c0_15 = arith.constant 0 : index
    %26 = vector.load %arg7[%c0_14, %c0_15] : memref<2x128xf32, #tpu.memory_space<vmem>>, vector<2x128xf32>
    tpu.vector_store %arg7[%c0_14, %c0_15], %25 {strides = array<i32>} : memref<2x128xf32, #tpu.memory_space<vmem>>, vector<2x128xf32>,
    %c0_16 = arith.constant 0 : index
    %c0_17 = arith.constant 0 : index
    %27 = vector.load %arg1[%c0_16, %c0_17] : memref<3x128xf32, #tpu.memory_space<vmem>>, vector<1x128xf32>
    %cst_18 = arith.constant 3.14159274 : f32
    %28 = vector.broadcast %cst_18 : f32 to vector<1x128xf32>
    %29 = arith.addf %27, %28 : vector<1x128xf32>
    %cst_19 = arith.constant 0.159154937 : f32
    %30 = vector.broadcast %cst_19 : f32 to vector<1x128xf32>
    %31 = arith.mulf %29, %30 : vector<1x128xf32>
    %32 = math.floor %31 : vector<1x128xf32>
    %cst_20 = arith.constant 6.28318548 : f32
    %33 = vector.broadcast %cst_20 : f32 to vector<1x128xf32>
    %34 = arith.mulf %33, %32 : vector<1x128xf32>
    %35 = arith.subf %29, %34 : vector<1x128xf32>
    %cst_21 = arith.constant 3.14159274 : f32
    %36 = vector.broadcast %cst_21 : f32 to vector<1x128xf32>
    %37 = arith.subf %35, %36 : vector<1x128xf32>
    %c1 = arith.constant 1 : index
    %c0_22 = arith.constant 0 : index
    %38 = vector.load %arg1[%c1, %c0_22] : memref<3x128xf32, #tpu.memory_space<vmem>>, vector<1x128xf32>
    %c0_23 = arith.constant 0 : index
    %c0_24 = arith.constant 0 : index
    %39 = vector.load %arg6[%c0_23, %c0_24] : memref<3x128xf32, #tpu.memory_space<vmem>>, vector<1x128xf32>
    tpu.vector_store %arg6[%c0_23, %c0_24], %38 {strides = array<i32>} : memref<3x128xf32, #tpu.memory_space<vmem>>, vector<1x128xf32>,
    %40 = math.sin %37 : vector<1x128xf32>
    %cst_25 = arith.constant 2.943000e+00 : f32
    %41 = vector.broadcast %cst_25 : f32 to vector<1x128xf32>
    %42 = arith.mulf %41, %40 : vector<1x128xf32>
    %c1_26 = arith.constant 1 : index
    %c0_27 = arith.constant 0 : index
    %43 = vector.load %arg7[%c1_26, %c0_27] : memref<2x128xf32, #tpu.memory_space<vmem>>, vector<1x128xf32>
    %cst_28 = arith.constant 3.000000e+00 : f32
    %44 = vector.broadcast %cst_28 : f32 to vector<1x128xf32>
    %45 = arith.mulf %44, %43 : vector<1x128xf32>
    %46 = arith.addf %42, %45 : vector<1x128xf32>
    %c1_29 = arith.constant 1 : index
    %c0_30 = arith.constant 0 : index
    %47 = vector.load %arg6[%c1_29, %c0_30] : memref<3x128xf32, #tpu.memory_space<vmem>>, vector<1x128xf32>
    tpu.vector_store %arg6[%c1_29, %c0_30], %46 {strides = array<i32>} : memref<3x128xf32, #tpu.memory_space<vmem>>, vector<1x128xf32>,
    %c0_31 = arith.constant 0 : index
    %c0_32 = arith.constant 0 : index
    %48 = vector.load %arg7[%c0_31, %c0_32] : memref<2x128xf32, #tpu.memory_space<vmem>>, vector<1x128xf32>
    %c2 = arith.constant 2 : index
    %c0_33 = arith.constant 0 : index
    %49 = vector.load %arg6[%c2, %c0_33] : memref<3x128xf32, #tpu.memory_space<vmem>>, vector<1x128xf32>
    tpu.vector_store %arg6[%c2, %c0_33], %48 {strides = array<i32>} : memref<3x128xf32, #tpu.memory_space<vmem>>, vector<1x128xf32>,
    return
  }
  func.func @transform_0(%arg0: i32) -> (i32, i32) {
    %c0_i32 = arith.constant 0 : i32
    %c0_i32_0 = arith.constant 0 : i32
    return %c0_i32, %arg0 : i32, i32
  }
  func.func @transform_1(%arg0: i32) -> (i32, i32) {
    %c0_i32 = arith.constant 0 : i32
    %c0_i32_0 = arith.constant 0 : i32
    %c0_i32_1 = arith.constant 0 : i32
    return %c0_i32, %c0_i32_0 : i32, i32
  }
  func.func @transform_2(%arg0: i32) -> (i32, i32) {
    %c0_i32 = arith.constant 0 : i32
    %c0_i32_0 = arith.constant 0 : i32
    %c0_i32_1 = arith.constant 0 : i32
    return %c0_i32, %c0_i32_0 : i32, i32
  }
  func.func @transform_3(%arg0: i32) -> (i32, i32) {
    %c0_i32 = arith.constant 0 : i32
    %c0_i32_0 = arith.constant 0 : i32
    %c0_i32_1 = arith.constant 0 : i32
    return %c0_i32, %c0_i32_0 : i32, i32
  }
  func.func @transform_4(%arg0: i32) -> (i32, i32) {
    %c0_i32 = arith.constant 0 : i32
    %c0_i32_0 = arith.constant 0 : i32
    %c0_i32_1 = arith.constant 0 : i32
    return %c0_i32, %c0_i32_0 : i32, i32
  }
  func.func @transform_5(%arg0: i32) -> (i32, i32) {
    %c0_i32 = arith.constant 0 : i32
    %c0_i32_0 = arith.constant 0 : i32
    return %c0_i32, %arg0 : i32, i32
  }
  func.func @transform_6(%arg0: i32) -> (i32, i32) {
    %c0_i32 = arith.constant 0 : i32
    %c0_i32_0 = arith.constant 0 : i32
    return %c0_i32, %arg0 : i32, i32
  }
}

</mosaic_0001>

<bundles_post_ra>
// kernel: tpu_custom_call.1
= control target key start
LH: loop header
LB: loop body
LE: loop exit
PB: predicated region body
PF: predicated region fallthrough
CT: control target
= control target key end

     0   :  { %12 = vsyncpa [#allocation3], 0  ;;  %vm63_vm0 = vcmask 23552   ;;  %v25_v4 = vlaneseq  ;;  %v524_v5 = vmov 0   ;;  %s671_s0 = inlined_call_operand.vmem [shape: f32[3,128], index: 0, kind: input, shape index: {}]   ;;  %s672_s1 = inlined_call_operand.vmem [shape: f32[32,3], index: 1, kind: input, shape index: {}]   ;;  %s673_s2 = inlined_call_operand.vmem [shape: f32[32,1], index: 2, kind: input, shape index: {}]   ;;  %s674_s3 = inlined_call_operand.vmem [shape: f32[2,32], index: 3, kind: input, shape index: {}]   ;;  %s675_s4 = inlined_call_operand.vmem [shape: f32[2,1], index: 4, kind: input, shape index: {}]   ;;  %s676_s5 = inlined_call_operand.hbm [shape: f32[3,128], index: 5, kind: output, shape index: {0}]   ;;  %s677_s6 = inlined_call_operand.hbm [shape: f32[2,128], index: 6, kind: output, shape index: {1}]  }
   0x1   :  { %v24_v0 = vld [vmem:[%s671_s0] sm:$0x7]  ;;  %462 = vset.pattern.permute.xlu0 %v524_v5  ;;  %463 = vset.pattern.permute.xlu1 %v524_v5  ;;  %v41_v6 = vld [vmem:[%s673_s2 + $0x10] sm:$0xff] }
   0x2   :  { %v35_v1 = vld [vmem:[%s672_s1] sm:$0xff]  ;;  %v27_v2 = vadd.f32 3.1415927, %v24_v0  ;;  %55 = vperm.xlu1 %463, %v41_v6  }
   0x3   :  { %423 = vmatprep.mubr.msk.f32.mxu0 %vm63_vm0, %v35_v1  ;;  %v39_v3 = vld [vmem:[%s673_s2] sm:$0xff] }
   0x4   :  { %v29_v7 = vmul.f32 0.15915494, %v27_v2  ;;  %45 = vperm.xlu0 %462, %v39_v3  }
   0x5   :  { %13 = vsyncpa [#allocation5], 0  ;;  %v40_v8 = vld [vmem:[%s673_s2 + $0x8] sm:$0xff]  ;;  %v42_v9 = vld [vmem:[%s673_s2 + $0x18] sm:$0xff]  ;;  %v26_v11 = vshrl.u32 %v25_v4, 7  ;;  %vm76_vm2 = vcmask 1042432  }
   0x6   :  { %v30_v10 = vfloor.f32 %v29_v7  ;;  %60 = vperm.xlu1 %463, %v42_v9   ;;  %v170_v13 = vld [vmem:[%s675_s4] sm:$0x3]  ;;  %v36_v17 = vld [vmem:[%s672_s1 + $0x8] sm:$0xff]  ;;  %v37_v18 = vld [vmem:[%s672_s1 + $0x10] sm:$0xff]  ;;  %v525_v20 = vmov 0.0|0.0   ;;  %vm526_vm3 = vmmov 0  }
   0x7   :  { %vm28_vm1 = vcmp.eq.s32.totalorder %v26_v11, 0  ;;  %v38_v19 = vld [vmem:[%s672_s1 + $0x18] sm:$0xff]  ;;  %440 = vmatprep.subr.bf16.mxu1 %v525_v20  ;;  %v527_v21 = vmov 0.0   ;;  %v169_v40 = vld [vmem:[%s674_s3] sm:$0x3]  ;;  %vm176_vm4 = vcmask 261120  }
   0x8   :  { %v31_v12 = vmul.f32 6.2831855, %v30_v10  ;;  %50 = vperm.xlu0 %462, %v40_v8   ;;  %437 = vmatprep.mubr.msk.f32.mxu1 %vm526_vm3, %v527_v21  ;;  %v251_v41 = vld [vmem:[%s671_s0] sm:$0x1]  ;;  %v528_v55 = vmov 2102212464  }
   0x9   :  { %v252_v42 = vadd.f32 3.1415927, %v251_v41  ;;  %v529_v57 = vmov 920167782   ;;  %v258_v59 = vld [vmem:[%s671_s0 + $0x1] sm:$0x1] }
   0xa   :  { %v32_v14 = vsub.f32 %v27_v2, %v31_v12  ;;  %v530_v63 = vmov 1326507024   ;;  %259 = vst [vmem:[#allocation2] sm:$0x1] %v258_v59  ;;  %v531_v1 = vmov 683565275  }
   0xb   :  { %v253_v43 = vmul.f32 0.15915494, %v252_v42  ;;  %v532_v3 = vmov 2475754826   ;;  %v533_v6 = vmov 2131351028  }
   0xc   :  { %v399_v15 = vadd.f32 -3.1415927, %v32_v14  ;;  %173 = vperm.xlu0 %462, %v170_v13   ;;  %s534_s0 = smov [#allocation4]  }
   0xd   :  { %v254_v44 = vfloor.f32 %v253_v43  ;;  %s387_s19 = sshll.u32 %s534_s0, 4  ;;  %s388_s19 = int_to_ptr.vmem [resolvable:$true] %s387_s19 }
   0xe   :  { %v34_v16 = vsel %vm28_vm1, %v399_v15, %v24_v0  ;;  %s476_s20 = scalar_lea.vmem %s388_s19, 32  ;;  %p481_p1 = scmp.lt.s32.totalorder %s388_s19, %s388_s19 }
   0xf   :  { %421 = vmatprep.subr.msk.mxu0 %vm76_vm2, %v34_v16  ;;  %v255_v45 = vmul.f32 6.2831855, %v254_v44  ;;  %p477_p0 = scmp.ne.s32.totalorder %s388_s19, %s476_s20  ;;  %p482_p2 = scmp.lt.s32.totalorder %s476_s20, %s476_s20 }
  0x10   :  { %422 = vmatpush3.msk.msra.mxu0 %vm76_vm2, %v34_v16 }
  0x11   :  { %424 = vmatmul.mubr.msk.f32.vlgmr.msra.gmra.mrb[0].mxu0 %vm63_vm0, %v36_v17  ;;  %v256_v46 = vsub.f32 %v252_v42, %v255_v45  ;;  %p483_p3 = por %p482_p2, %p481_p1 }
  0x12   :  { %426 = vmatprep.mubr.msk.f32.mxu0 %vm63_vm0, %v37_v18 }
  0x13   :  { %v611_v47 = vadd.f32 -3.1415927, %v256_v46  ;;  %p484_p4 = pnand %p483_p3, %p477_p0 }
  0x15   :  { %427 = vmatmul.mubr.msk.f32.gmra.mrb[2].mxu0 %vm63_vm0, %v38_v19  ;;  %v263_v48 = vand.u32 2139095040, %v611_v47  ;;  %v260_v60 = vand.u32 2147483647, %v611_v47  ;;  %vm262_vm12 = vcmp.lt.s32.totalorder %v611_v47, 0  ;;  %vm352_vm1 = vweird.f32 %v611_v47 }
  0x17   :  { %v264_v49 = vshrl.u32 %v263_v48, 23  ;;  %v267_v11 = vand.u32 8388607, %v260_v60  ;;  %vm261_vm13 = vcmp.le.f32.partialorder %v260_v60, 0.7853982 }
  0x19   :  { %v407_v50 = vadd.s32 4294967169, %v264_v49  ;;  %v268_v17 = vor.u32 8388608, %v267_v11 }
  0x1b   :  { %v270_v51 = vadd.s32 1, %v407_v50 }
  0x1d   :  { %vm271_vm5 = vcmp.gt.s32.totalorder %v270_v51, 0 }
  0x1e   :  { %v272_v52 = vsel %vm271_vm5, %v270_v51, 0 }
  0x1f   :  { %v274_v53 = vand.u32 31, %v272_v52  ;;  %v273_v61 = vshrl.u32 %v272_v52, 5 }
  0x21   :  { %v275_v54 = vsub.s32 32, %v274_v53  ;;  %v286_v56 = vshll.u32 %v528_v55, %v274_v53  ;;  %v289_v62 = vshll.u32 %v529_v57, %v274_v53  ;;  %v277_v2 = vshll.u32 %v531_v1, %v274_v53 }
  0x22   :  { %v280_v5 = vshll.u32 %v532_v3, %v274_v53  ;;  %v283_v8 = vshll.u32 %v533_v6, %v274_v53  ;;  %vm295_vm6 = vcmp.lt.s32.totalorder %v273_v61, 4  ;;  %vm292_vm7 = vcmp.lt.s32.totalorder %v273_v61, 1 }
  0x23   :  { %v287_v58 = vshrl.u32 %v529_v57, %v275_v54  ;;  %v290_v0 = vshrl.u32 %v530_v63, %v275_v54  ;;  %v278_v4 = vshrl.u32 %v532_v3, %v275_v54  ;;  %v281_v7 = vshrl.u32 %v533_v6, %v275_v54 }
  0x24   :  { %v284_v9 = vshrl.u32 %v528_v55, %v275_v54  ;;  %vm294_vm8 = vcmp.lt.s32.totalorder %v273_v61, 3  ;;  %vm293_vm9 = vcmp.lt.s32.totalorder %v273_v61, 2 }
  0x25   :  { %v288_v10 = vor.u32 %v287_v58, %v286_v56  ;;  %v291_v12 = vor.u32 %v290_v0, %v289_v62  ;;  %v279_v13 = vor.u32 %v278_v4, %v277_v2  ;;  %v282_v14 = vor.u32 %v281_v7, %v280_v5 }
  0x26   :  { %v285_v15 = vor.u32 %v284_v9, %v283_v8 }
  0x27   :  { %v301_v16 = vsel %vm295_vm6, %v288_v10, 920167782  ;;  %v305_v18 = vsel %vm295_vm6, %v291_v12, 1326507024  ;;  %v300_v19 = vsel %vm292_vm7, %v279_v13, %v282_v14 }
  0x28   :  { %v304_v21 = vsel %vm292_vm7, %v282_v14, %v285_v15 }
  0x81   :  { %v56_v23 = vpop.permute.xlu1 %55 }
  0x83   :  { %v46_v22 = vpop.permute.xlu0 %45 }
  0x85   :  { %v61_v29 = vpop.permute.xlu1 %60 }
  0x87   :  { %v51_v24 = vpop.permute.xlu0 %50 }
  0xe4   :  { %v425_v25 = vpop.f32.mrb[0].mxu0 }
  0xe5   :  { %v152_v26 = vadd.f32 %v425_v25, %v51_v24  ;;  %v146_v27 = vpop.f32.mrb[1].mxu0 }
  0xe6   :  { %v147_v28 = vadd.f32 %v146_v27, %v46_v22  ;;  %v306_v22 = vsel %vm294_vm8, %v288_v10, %v305_v18  ;;  %v174_v10 = vpop.permute.xlu0 %173 }
  0xe7   :  { %464 = vtanh.f32 %v152_v26  ;;  %v307_v25 = vsel %vm293_vm9, %v304_v21, %v306_v22 }
  0xe8   :  { %466 = vtanh.f32 %v147_v28  ;;  %v428_v30 = vpop.f32.mrb[2].mxu0  ;;  %v276_v28 = vshrl.u32 %v531_v1, %v275_v54 }
  0xe9   :  { %v162_v31 = vadd.f32 %v428_v30, %v61_v29  ;;  %v156_v32 = vpop.f32.mrb[3].mxu0 }
  0xea   :  { %v157_v33 = vadd.f32 %v156_v32, %v56_v23  ;;  %v308_v23 = vshll.u32 %v268_v17, 8  ;;  %v296_v32 = vsel %vm292_vm7, %v276_v28, %v279_v13 }
  0xeb   :  { %468 = vtanh.f32 %v162_v31  ;;  %v297_v31 = vsel %vm295_vm6, %v285_v15, 2102212464 }
  0xec   :  { %470 = vtanh.f32 %v157_v33  ;;  %v631_v29 = vmul.u32.u64.low %v308_v23, %v307_v25  ;;  %v632_v30 = vmul.u32.u64.high %v308_v23, %v307_v25, %v631_v29  ;;  %v298_v33 = vsel %vm294_vm8, %v282_v14, %v297_v31 }
  0xf1   :  { %v465_v34 = vpop.eup %464 }
  0xf2   :  { %v467_v35 = vpop.eup %466 }
  0xf3   :  { %v441_v36 = vpack.c.bf16 %v465_v34, %v467_v35  ;;  %v299_v34 = vsel %vm293_vm9, %v296_v32, %v298_v33 }
  0xf5   :  { %v469_v37 = vpop.eup %468  ;;  %442 = vmatpush3.bf16.msra.mxu1 %v441_v36  ;;  %v315_v36 = vmul.u32 %v308_v23, %v299_v34 }
  0xf6   :  { %v471_v38 = vpop.eup %470  ;;  %443 = vmatprep.subr.bf16.mxu1 %v525_v20  ;;  %v302_v20 = vsel %vm294_vm8, %v285_v15, %v301_v16 }
  0xf7   :  { %v444_v39 = vpack.c.bf16 %v469_v37, %v471_v38  ;;  %v303_v24 = vsel %vm293_vm9, %v300_v19, %v302_v20 }
  0xf8   :  { %v628_v26 = vmul.u32.u64.low %v308_v23, %v303_v24  ;;  %v629_v27 = vmul.u32.u64.high %v308_v23, %v303_v24, %v628_v26 }
  0xf9   :  { %445 = vmatpush3.bf16.msra.mxu1 %v444_v39 }
  0xfa   :  { %v318_v35 = vadd.s32 1, %v629_v27  ;;  %vm317_vm10 = vc.u32 %v632_v30, %v628_v26  ;;  %v316_v50 = vadd.s32 %v628_v26, %v632_v30 }
  0xfc   :  { %438 = vmatmul.mubr.msk.f32.vlgmr.msra.gmra.mrb[0].mxu1 %vm176_vm4, %v169_v40  ;;  %v319_v37 = vsel %vm317_vm10, %v318_v35, %v629_v27 }
  0xfd   :  { %v320_v38 = vadd.s32 %v319_v37, %v315_v36 }
  0xff   :  { %v321_v39 = vadd.s32 536870912, %v320_v38 }
 0x101   :  { %v322_v40 = vshrl.u32 %v321_v39, 30 }
 0x103   :  { %v323_v41 = vshll.u32 %v322_v40, 30  ;;  %v346_v0 = vsub.s32 4, %v322_v40 }
 0x105   :  { %v324_v42 = vsub.s32 %v320_v38, %v323_v41  ;;  %v347_v2 = vsel %vm262_vm12, %v346_v0, %v322_v40 }
 0x106   :  { %v349_v3 = vsel %vm261_vm13, 0, %v347_v2 }
 0x107   :  { %v326_v43 = vsub.s32 0, %v324_v42  ;;  %v353_v4 = vadd.s32 3, %v349_v3 }
 0x109   :  { %v408_v44 = vmin.u32 %v326_v43, %v324_v42  ;;  %v354_v7 = vand.u32 3, %v353_v4 }
 0x10b   :  { %v328_v45 = vclz %v408_v44  ;;  %vm356_vm14 = vcmp.eq.s32.totalorder %v354_v7, 0  ;;  %vm359_vm15 = vcmp.eq.s32.totalorder %v354_v7, 2  ;;  %vm355_vm0 = vcmp.lt.s32.totalorder %v354_v7, 2 }
 0x10d   :  { %v409_v46 = vadd.s32 4294967294, %v328_v45 }
 0x10f   :  { %vm410_vm11 = vcmp.lt.s32.totalorder %v409_v46, 0 }
 0x110   :  { %v331_v48 = vsel %vm410_vm11, 0, %v409_v46 }
 0x111   :  { %v336_v49 = vsub.s32 4294967266, %v331_v48  ;;  %v332_v51 = vsub.s32 32, %v331_v48  ;;  %v333_v53 = vshll.u32 %v324_v42, %v331_v48 }
 0x113   :  { %v337_v52 = vadd.s32 127, %v336_v49  ;;  %v334_v54 = vshrl.u32 %v316_v50, %v332_v51 }
 0x115   :  { %v338_v55 = vshll.u32 %v337_v52, 23  ;;  %v335_v56 = vor.u32 %v334_v54, %v333_v53 }
 0x117   :  { %v339_v57 = vor.u32 4788187, %v338_v55  ;;  %v342_v59 = vcvt.s32.f32 %v335_v56 }
 0x119   :  { %v340_v58 = vand.u32 2147483647, %v339_v57 }
 0x11b   :  { %v343_v61 = vmul.f32 %v342_v59, %v340_v58 }
 0x11d   :  { %v344_v62 = vxor.u32 2147483648, %v343_v61 }
 0x11f   :  { %v345_v63 = vsel %vm262_vm12, %v344_v62, %v343_v61 }
 0x120   :  { %v348_v1 = vsel %vm261_vm13, %v611_v47, %v345_v63 }
 0x121   :  { %472 = vcosq.f32 %v348_v1 }
 0x122   :  { %474 = vsinq.f32 %v348_v1 }
 0x12b   :  { %v473_v5 = vpop.eup %472 }
 0x12c   :  { %v475_v6 = vpop.eup %474  ;;  %v360_v9 = vxor.u32 2147483648, %v473_v5 }
 0x12d   :  { %v357_v8 = vxor.u32 2147483648, %v475_v6 }
 0x12e   :  { %v361_v12 = vsel %vm359_vm15, %v360_v9, %v475_v6 }
 0x12f   :  { %v358_v11 = vsel %vm356_vm14, %v473_v5, %v357_v8 }
 0x130   :  { %v362_v15 = vsel %vm355_vm0, %v358_v11, %v361_v12 }
 0x1cf   :  { %v246_v60 = vpop.f32.mrb[0].mxu1 }
 0x1d0   :  { %v247_v13 = vadd.f32 %v246_v60, %v174_v10  ;;  %v439_v14 = vpop.f32.mrb[1].mxu1 }
 0x1d2   :  { %250 = vst [vmem:[#allocation4] sm:$0x3] %v247_v13 }
 0x1d3   :  { %487 = shalt.err (!%p484_p4)
}
 0x1d4   :  { %s488_s23 = scalar_lea.hbm %s677_s6, 32 }
 0x1d5   :  { %p489_p5 = scmp.ne.s32.totalorder %s677_s6, %s488_s23  ;;  %p492_p6 = scmp.lt.u32.totalorder %s488_s23, %s677_s6 }
 0x1d7   :  { %p494_p7 = pnand %p492_p6, %p489_p5 }
 0x1d9   :  { %497 = shalt.err (!%p494_p7)
}
 0x1da   :  { %390 = dma.vmem_to_hbm [thread:$0]  %s388_s19, 32, %s677_s6, [#allocation5]   ;;  %v363_v47 = vsel %vm352_vm1, nan, %v362_v15  ;;  %v365_v17 = vld [vmem:[#allocation4 + $0x1] sm:$0x1] }
 0x1db   :  { %v364_v16 = vmul.f32 2.943, %v363_v47  ;;  %v369_v18 = vld [vmem:[#allocation4] sm:$0x1]  ;;  %s535_s30 = smov [#allocation2]   ;;  %v366_v19 = vmul.f32 3.0, %v365_v17 }
 0x1dc   :  { %s377_s7 = sshll.u32 %s535_s30, 4  ;;  %370 = vst [vmem:[#allocation2 + $0x2] sm:$0x1] %v369_v18  ;;  %s378_s7 = int_to_ptr.vmem [resolvable:$true] %s377_s7 }
 0x1dd   :  { %v367_v20 = vadd.f32 %v366_v19, %v364_v16  ;;  %s498_s8 = scalar_lea.vmem %s378_s7, 64  ;;  %p503_p9 = scmp.lt.s32.totalorder %s378_s7, %s378_s7 }
 0x1de   :  { %p499_p8 = scmp.ne.s32.totalorder %s378_s7, %s498_s8  ;;  %p504_p10 = scmp.lt.s32.totalorder %s498_s8, %s498_s8 }
 0x1df   :  { %368 = vst [vmem:[#allocation2 + $0x1] sm:$0x1] %v367_v20 }
 0x1e0   :  { %p505_p11 = por %p504_p10, %p503_p9 }
 0x1e2   :  { %p506_p12 = pnand %p505_p11, %p499_p8 }
 0x1e4   :  { %509 = shalt.err (!%p506_p12)
}
 0x1e5   :  { %s510_s10 = scalar_lea.hbm %s676_s5, 64 }
 0x1e6   :  { %p511_p13 = scmp.ne.s32.totalorder %s676_s5, %s510_s10  ;;  %p514_p0 = scmp.lt.u32.totalorder %s510_s10, %s676_s5 }
 0x1e8   :  { %p516_p1 = pnand %p514_p0, %p511_p13 }
 0x1ea   :  { %519 = shalt.err (!%p516_p1)
}
 0x1eb   :  { %380 = dma.vmem_to_hbm [thread:$0]  %s378_s7, 64, %s676_s5, [#allocation3]  }
 0x1ec   :  { %520 = dma.done.wait [#allocation3], 64  }
 0x1ed   :  { %521 = vsyncadd [#allocation3], 4294967232 }
 0x1ee   :  { %522 = dma.done.wait [#allocation5], 32  }
 0x1ef   :  { %523 = vsyncadd [#allocation5], 4294967264 }
 0x1f0   :  { %397 = vsyncpa [#allocation3], 1 }
 0x1f1   :  { %398 = vsyncpa [#allocation5], 1 }

</bundles_post_ra>
